<compile_context>
chip_gen: v6e
topology: v6e:2x2x1
jax: 0.10.0
libtpu: 0.0.40
codegen_flags: <defaults>
</compile_context>

<pallas_src>
import jax
import jax.numpy as jnp
from jax.experimental import pallas as pl
from jax.experimental.pallas import tpu as pltpu

_SMALL_BYPASS_BYTES = 4 * 1024 * 1024   # below ~1 tile: skip pallas_call entirely
_LANE_MIN = 128                         # minimum lane-dense width


def _encoder_identity_kernel(x_ref, o_ref):
    # TODO(synk): Encoder.forward is abstract (raises NotImplementedError);
    # replace this identity body with the concrete subclass's compute,
    # writing results directly into o_ref (no staging copy).
    o_ref[...] = x_ref[...]


def _sublane_multiple(dtype) -> int:
    """Dtype-packed sublane multiple: 8 for 4-byte, 16 for 2-byte, 32 for 1-byte."""
    itemsize = jnp.dtype(dtype).itemsize
    return max(8, 32 // max(1, itemsize))


def _pick_block_bytes() -> int:
    """Generation-aware target bytes per row tile."""
    try:
        info = pltpu.get_tpu_info()
        vmem = getattr(info, "vmem_capacity_bytes", None)
        if vmem is not None and vmem <= 64 * 1024 * 1024:
            # v7x: 64 MiB/TC VMEM but ~3.2 TB/s HBM -> bigger blocks amortize
            # the ~0.35 us per-grid-step overhead; 2 in + 2 out x 8 MiB fits.
            return 8 * 1024 * 1024
    except Exception:
        pass
    # v5e / v6e (0.8-1.4 TB/s HBM): 4 MiB is already past the knee.
    return 4 * 1024 * 1024


def _pick_lane_width(total: int):
    """Largest lane-dense width (multiple of 128) that divides total, else None."""
    for w in (512, 256, 128):
        if total % w == 0:
            return w
    return None


def _identity_stream(x2d: jax.Array, aliased: bool) -> jax.Array:
    """Stream a (rows, width) lane-dense slab through the identity kernel."""
    rows, width = x2d.shape
    itemsize = jnp.dtype(x2d.dtype).itemsize
    sub = _sublane_multiple(x2d.dtype)

    tile_rows = _pick_block_bytes() // (width * itemsize)
    tile_rows = max(sub, (tile_rows // sub) * sub)
    if tile_rows >= rows:
        if rows > sub:
            # Force >=2 grid steps so both v7x TensorCores get work.
            half = pl.cdiv(rows, 2)
            tile_rows = ((half + sub - 1) // sub) * sub
        else:
            # Single block equal to the full array dims — always legal.
            tile_rows = rows
    grid = (pl.cdiv(rows, tile_rows),)  # ragged last block: Pallas write-masks it

    tile_bytes = tile_rows * width * itemsize
    # 2 input + 2 output double-buffers plus slack; floor for compiler scratch.
    vmem_limit = max(4 * tile_bytes + (2 << 20), 8 << 20)

    alias_kwargs = {"input_output_aliases": {0: 0}} if aliased else {}

    return pl.pallas_call(
        _encoder_identity_kernel,
        out_shape=jax.ShapeDtypeStruct((rows, width), x2d.dtype),
        grid=grid,
        in_specs=[pl.BlockSpec((tile_rows, width), lambda i: (i, 0))],
        out_specs=pl.BlockSpec((tile_rows, width), lambda i: (i, 0)),
        compiler_params=pltpu.CompilerParams(
            dimension_semantics=("parallel",),   # shards grid across v7x TCs
            vmem_limit_bytes=int(vmem_limit),
        ),
        **alias_kwargs,
    )(x2d)


def encoder_forward(x: jax.Array, *args,
                    small_bypass_bytes: int = _SMALL_BYPASS_BYTES) -> jax.Array:
    """Base-Encoder 'forward': streams X through a Pallas kernel unchanged."""
    total = x.size
    itemsize = jnp.dtype(x.dtype).itemsize

    # Small-input bypass: identity semantics are exact; avoid launch overhead.
    if total == 0 or total * itemsize < small_bypass_bytes:
        return x

    orig_shape = x.shape
    width = _pick_lane_width(total)

    if width is not None:
        # Fast path: free metadata reshape to a lane-dense slab, no HBM copies.
        x2d = x.reshape(total // width, width)
        out2d = _identity_stream(x2d, aliased=False)
        return out2d.reshape(orig_shape)

    # Ragged fallback (total not a multiple of 128): pad once to a private
    # temp, alias it to the output, and slice the tail back off.
    width = _LANE_MIN
    padded_total = pl.cdiv(total, width) * width
    flat = jnp.pad(x.reshape(-1), (0, padded_total - total))
    x2d = flat.reshape(padded_total // width, width)
    out2d = _identity_stream(x2d, aliased=True)
    return out2d.reshape(-1)[:total].reshape(orig_shape)


if __name__ == "__main__":
    key = jax.random.PRNGKey(0)
    k1, k2, k3 = jax.random.split(key, 3)

    # Canonical small encoder-style NCHW input: takes the small-input bypass.
    x_small = jax.random.normal(k1, (2, 4, 16, 16), dtype=jnp.float32)
    y_small = encoder_forward(x_small)
    jax.block_until_ready(y_small)
    assert y_small.shape == x_small.shape and y_small.dtype == x_small.dtype
    assert bool(jnp.allclose(y_small, x_small))

    # Medium input forced through the Pallas streaming kernel (bypass off):
    # total = 32768 (multiple of 512) -> pad-free lane-dense path, grid=(2,).
    x_med = jax.random.normal(k2, (4, 8, 32, 32), dtype=jnp.float32)
    y_med = encoder_forward(x_med, small_bypass_bytes=0)
    jax.block_until_ready(y_med)
    assert y_med.shape == x_med.shape and y_med.dtype == x_med.dtype
    assert bool(jnp.allclose(y_med, x_med))

    # Ragged total (231 elems, not a multiple of 128): pad fallback path.
    x_rag = jax.random.normal(k3, (3, 7, 11), dtype=jnp.float32)
    y_rag = encoder_forward(x_rag, small_bypass_bytes=0)
    jax.block_until_ready(y_rag)
    assert y_rag.shape == x_rag.shape and y_rag.dtype == x_rag.dtype
    assert bool(jnp.allclose(y_rag, x_rag))

    print("KERNEL_OK")
</pallas_src>

<mosaic_0001>
module attributes {stable_mosaic.version = 11 : i64} {
  func.func @_encoder_identity_kernel(%arg0: i32, %arg1: memref<32x512xf32, #tpu.memory_space<vmem>>, %arg2: memref<32x512xf32, #tpu.memory_space<vmem>>) attributes {dimension_semantics = [#tpu.dimension_semantics<parallel>], iteration_bounds = array<i64: 2>, scalar_prefetch = 0 : i64, scratch_operands = 0 : i64, tpu.core_type = #tpu.core_type<tc>, window_params = [{transform_indices = @transform_0, window_bounds = array<i64: 32, 512>}, {transform_indices = @transform_1, window_bounds = array<i64: 32, 512>}]} {
    %c0 = arith.constant 0 : index
    %c0_0 = arith.constant 0 : index
    %0 = vector.load %arg1[%c0, %c0_0] : memref<32x512xf32, #tpu.memory_space<vmem>>, vector<32x512xf32>
    %c0_1 = arith.constant 0 : index
    %c0_2 = arith.constant 0 : index
    %1 = vector.load %arg2[%c0_1, %c0_2] : memref<32x512xf32, #tpu.memory_space<vmem>>, vector<32x512xf32>
    tpu.vector_store %arg2[%c0_1, %c0_2], %0 {strides = array<i32>} : memref<32x512xf32, #tpu.memory_space<vmem>>, vector<32x512xf32>,
    return
  }
  func.func @transform_0(%arg0: i32) -> (i32, i32) {
    %c0_i32 = arith.constant 0 : i32
    %c0_i32_0 = arith.constant 0 : i32
    return %arg0, %c0_i32 : i32, i32
  }
  func.func @transform_1(%arg0: i32) -> (i32, i32) {
    %c0_i32 = arith.constant 0 : i32
    %c0_i32_0 = arith.constant 0 : i32
    return %arg0, %c0_i32 : i32, i32
  }
}

</mosaic_0001>

<bundles_post_ra>
// kernel: tpu_custom_call.1
= control target key start
LH: loop header
LB: loop body
LE: loop exit
PB: predicated region body
PF: predicated region fallthrough
CT: control target
= control target key end

     0   :  { %6 = vsyncpa [#allocation3], 0  ;;  %s629_s0 = inlined_call_operand.hbm [shape: f32[64,512], index: 0, kind: input, shape index: {}]   ;;  %s630_s1 = inlined_call_operand.hbm [shape: f32[64,512], index: 1, kind: output, shape index: {}]  }
   0x1   :  { %8 = vsyncpa [#allocation3 + $0x1], 0 }
   0x2   :  { %9 = vsyncpa [#allocation4], 0 }
   0x3   :  { %11 = vsyncpa [#allocation4 + $0x1], 0  ;;  %s438_s6 = smov 0   ;;  %s440_s7 = smov 0  }
   0x4   :  { %s442_s8 = smov 0   ;;  %s444_s9 = smov 0  }
   0x5 LB: > { %s459_s10 = sadd.s32 4294967295, %s420_s9   ;;  %s258_s11 = sadd.s32 4294967294, %s420_s9   ;;  %s420_s9 = sphi %s444_s9, %s645_s9   ;;  %s416_s8 = sphi %s442_s8, %s644_s8   ;;  %s412_s7 = sphi %s440_s7, %s643_s7   ;;  %s408_s6 = sphi %s438_s6, %s642_s6  }
   0x6   : > { %s463_s12 = sadd.s32 1, %s420_s9   ;;  %s24_s13 = sadd.s32 1, %s416_s8 }
   0x7   : > { %s21_s14 = ssub.s32 %s420_s9, %s463_s12  ;;  %p31_p0 = scmp.ne.s32.totalorder %s416_s8, %s412_s7 }
   0x8   : > { %p22_p1 = scmp.eq.s32.totalorder %s21_s14, 0  ;;  %p32_p2 = scmp.eq.s32.totalorder %s420_s9, 0 }
   0x9   : > { %p37_p3 = scmp.ne.s32.totalorder %s412_s7, %s408_s6  ;;  %p38_p4 = scmp.eq.s32.totalorder %s459_s10, 0 }
   0xa   : > { %s475_s15 = scalar_select %p22_p1, %s416_s8, %s24_s13  }
   0xb   : > { %p477_p5 = por %p32_p2, %p31_p0  ;;  %p481_p6 = por %p38_p4, %p37_p3 }
   0xc   : > { %p61_p7 = scmp.eq.s32.totalorder %s459_s10, 1  ;;  %p67_p8 = scmp.eq.s32.totalorder %s258_s11, 1 }
   0xd   : > { %s634_s17 = scalar_select %p481_p6, 1, 0 }
   0xe   : > { %p290_p10 = scmp.lt.s32.totalorder %s420_s9, 2  ;;  %p488_p11 = por %p61_p7, %p31_p0 }
   0xf   : > { %p492_p12 = por %p67_p8, %p37_p3  ;;  %s87_s20 = sand.u32 1, %s416_s8  }
  0x10   : > { %s635_s18 = scalar_select %p488_p11, 1, 0 }
  0x11   : > { %s636_s19 = scalar_select %p492_p12, 1, 0 }
  0x12   : > { %s275_s21 = sshll.u32 %s420_s9, 11  ;;  %s261_s22 = sshll.u32 %s87_s20, 7 }
  0x13   : > { %s501_s25 = scalar_lea.hbm %s629_s0, %s275_s21  ;;  %s91_s26 = scalar_lea.vmem [#allocation2], %s261_s22 }
  0x14   : > { %s99_s27 = sshll.u32 %s91_s26, 4  ;;  %p505_p13 = pnand %p290_p10, %p477_p5  ;;  %s509_s27 = int_to_ptr.vmem [resolvable:$true] %s99_s27 }
  0x15   : > { %s511_s29 = scalar_lea.sflag [#allocation3], %s87_s20  ;;  %s328_s30 = scalar_lea.hbm %s501_s25, 2048 }
  0x16   : > { %p329_p0 = scmp.ne.s32.totalorder %s501_s25, %s328_s30  ;;  %p330_p1 = pneg %p505_p13 }
  0x17   : > { %s333_s4 = scalar_lea.hbm %s629_s0, 4096  ;;  %p334_p4 = scmp.lt.s32.totalorder %s501_s25, %s629_s0 }
  0x18   : > { %p331_p2 = pnand %p330_p1, %p329_p0  ;;  %p335_p5 = scmp.lt.s32.totalorder %s333_s4, %s328_s30 }
  0x1a   : > { %p332_p3 = pneg %p331_p2  ;;  %p336_p7 = por %p335_p5, %p334_p4 }
  0x1c   : > { %p337_p8 = pnand %p336_p7, %p332_p3 }
  0x1e   : > { %340 = shalt.err (!%p337_p8)
}
  0x1f   : > { %s341_s13 = scalar_lea.vmem %s509_s27, 2048  ;;  %s422_s14 = smov [#allocation2]  }
  0x20   : > { %p342_p10 = scmp.ne.s32.totalorder %s509_s27, %s341_s13  ;;  %s346_s16 = sshll.u32 %s422_s14, 4  ;;  %s347_s16 = int_to_ptr.vmem [resolvable:$false] %s346_s16 }
  0x21   : > { %s348_s20 = scalar_lea.vmem %s347_s16, 4096  ;;  %p349_p2 = scmp.lt.s32.totalorder %s509_s27, %s347_s16 }
  0x22   : > { %p344_p9 = pnand %p342_p10, %p330_p1  ;;  %p350_p12 = scmp.lt.s32.totalorder %s348_s20, %s341_s13 }
  0x24   : > { %p345_p0 = pneg %p344_p9  ;;  %p351_p11 = por %p350_p12, %p349_p2 }
  0x26   : > { %p352_p6 = pnand %p351_p11, %p345_p0 }
  0x28   : > { %355 = shalt.err (!%p352_p6)
}
  0x29   : > { %s423_s21 = smov 512   ;;  %s424_s22 = smov 32  }
  0x2a   : > { %285 = dma.hbm_to_vmem [thread:$0]  (!%p505_p13), %s501_s25, 2048, %s509_s27, %s511_s29, %s423_s21, %s423_s21, %s424_s22  }
  0x2b   : > { %p265_p9 = scmp.ge.s32.totalorder %s420_s9, 1  ;;  %p107_p1 = scmp.lt.s32.totalorder %s420_s9, 3 }
  0x2d   : > { %p108_p3 = pnand %p265_p9, %p107_p1 }
  0x2e   : > { %s535_s23 = sand.u32 (!%p108_p3), 1, %s412_s7   ;;  %p638_p6 = scmp.ne.s32.totalorder (!%p108_p3), %s634_s17, 0 }
  0x2f   : > { %111 = sbr.rel (%p108_p3) target bundleno = 79 (0x4f), region = 24  ;;  %s266_s24 = sshll.u32 (!%p108_p3), %s535_s23, 7 }
  0x30   : > { %s114_s26 = scalar_lea.sflag (!%p108_p3), [#allocation3], %s535_s23  ;;  %s539_s30 = scalar_lea.vmem (!%p108_p3), [#allocation2], %s266_s24 }
  0x34   : > { %399 = dma.done.wait (%p638_p6), %s114_s26, 2048  }
  0x35   : > { %401 = vsyncadd (%p638_p6), %s114_s26, 4294965248  ;;  %v138_v0 = vld [vmem:[%s539_s30] sm:$0xff]  ;;  %v139_v1 = vld [vmem:[%s539_s30 + $0x8] sm:$0xff]  ;;  %s277_s25 = sshll.u32 %s459_s10, 11  ;;  %s549_s27 = scalar_lea.vmem [#allocation5], %s266_s24 }
  0x36   : > { %v140_v2 = vld [vmem:[%s539_s30 + $0x10] sm:$0xff]  ;;  %s185_s17 = sshll.u32 %s549_s27, 4  ;;  %154 = vst [vmem:[%s549_s27] sm:$0xff] %v138_v0  ;;  %155 = vst [vmem:[%s549_s27 + $0x8] sm:$0xff] %v139_v1  ;;  %v141_v3 = vld [vmem:[%s539_s30 + $0x18] sm:$0xff]  ;;  %s573_s29 = scalar_lea.hbm %s630_s1, %s277_s25  ;;  %s575_s17 = int_to_ptr.vmem [resolvable:$true] %s185_s17 }
  0x37   : > { %156 = vst [vmem:[%s549_s27 + $0x10] sm:$0xff] %v140_v2  ;;  %v142_v4 = vld [vmem:[%s539_s30 + $0x20] sm:$0xff]  ;;  %v143_v5 = vld [vmem:[%s539_s30 + $0x28] sm:$0xff]  ;;  %157 = vst [vmem:[%s549_s27 + $0x18] sm:$0xff] %v141_v3  ;;  %s171_s2 = scalar_lea.sflag [#allocation4], %s535_s23  ;;  %s356_s3 = scalar_lea.vmem %s575_s17, 2048 }
  0x38   : > { %158 = vst [vmem:[%s549_s27 + $0x20] sm:$0xff] %v142_v4  ;;  %159 = vst [vmem:[%s549_s27 + $0x28] sm:$0xff] %v143_v5  ;;  %v144_v6 = vld [vmem:[%s539_s30 + $0x30] sm:$0xff]  ;;  %v145_v7 = vld [vmem:[%s539_s30 + $0x38] sm:$0xff]  ;;  %p357_p11 = scmp.ne.s32.totalorder %s575_s17, %s356_s3  ;;  %p639_p12 = scmp.ne.s32.totalorder %s635_s18, 0 }
  0x39   : > { %v146_v8 = vld [vmem:[%s539_s30 + $0x40] sm:$0xff]  ;;  %160 = vst [vmem:[%s549_s27 + $0x30] sm:$0xff] %v144_v6  ;;  %161 = vst [vmem:[%s549_s27 + $0x38] sm:$0xff] %v145_v7  ;;  %v147_v9 = vld [vmem:[%s539_s30 + $0x48] sm:$0xff]  ;;  %s425_s4 = smov [#allocation5]  }
  0x3a   : > { %162 = vst [vmem:[%s549_s27 + $0x40] sm:$0xff] %v146_v8  ;;  %v148_v10 = vld [vmem:[%s539_s30 + $0x50] sm:$0xff]  ;;  %v149_v11 = vld [vmem:[%s539_s30 + $0x58] sm:$0xff]  ;;  %163 = vst [vmem:[%s549_s27 + $0x48] sm:$0xff] %v147_v9  ;;  %p358_p13 = pnand %p357_p11, %p639_p12  ;;  %s360_s5 = sshll.u32 %s425_s4, 4  ;;  %s361_s5 = int_to_ptr.vmem [resolvable:$false] %s360_s5 }
  0x3b   : > { %164 = vst [vmem:[%s549_s27 + $0x50] sm:$0xff] %v148_v10  ;;  %165 = vst [vmem:[%s549_s27 + $0x58] sm:$0xff] %v149_v11  ;;  %v150_v12 = vld [vmem:[%s539_s30 + $0x60] sm:$0xff]  ;;  %v151_v13 = vld [vmem:[%s539_s30 + $0x68] sm:$0xff]  ;;  %s362_s11 = scalar_lea.vmem %s361_s5, 4096  ;;  %p363_p5 = scmp.lt.s32.totalorder %s575_s17, %s361_s5 }
  0x3c   : > { %v152_v14 = vld [vmem:[%s539_s30 + $0x70] sm:$0xff]  ;;  %166 = vst [vmem:[%s549_s27 + $0x60] sm:$0xff] %v150_v12  ;;  %167 = vst [vmem:[%s549_s27 + $0x68] sm:$0xff] %v151_v13  ;;  %v153_v15 = vld [vmem:[%s539_s30 + $0x78] sm:$0xff]  ;;  %p359_p4 = pneg %p358_p13  ;;  %p364_p7 = scmp.lt.s32.totalorder %s362_s11, %s356_s3 }
  0x3d   : > { %168 = vst [vmem:[%s549_s27 + $0x70] sm:$0xff] %v152_v14  ;;  %169 = vst [vmem:[%s549_s27 + $0x78] sm:$0xff] %v153_v15 }
  0x3e   : > { %p365_p8 = por %p364_p7, %p363_p5 }
  0x40   : > { %p366_p10 = pnand %p365_p8, %p359_p4 }
  0x42   : > { %369 = shalt.err (!%p366_p10)
}
  0x43   : > { %s370_s13 = scalar_lea.hbm %s573_s29, 2048  ;;  %s374_s20 = scalar_lea.hbm %s630_s1, 4096 }
  0x44   : > { %p371_p0 = scmp.ne.s32.totalorder %s573_s29, %s370_s13  ;;  %p375_p1 = scmp.lt.s32.totalorder %s573_s29, %s630_s1 }
  0x45   : > { %p376_p3 = scmp.lt.s32.totalorder %s374_s20, %s370_s13 }
  0x46   : > { %p372_p2 = pnand %p371_p0, %p639_p12 }
  0x47   : > { %p377_p6 = por %p376_p3, %p375_p1 }
  0x48   : > { %p373_p9 = pneg %p372_p2 }
  0x4a   : > { %p378_p11 = pnand %p377_p6, %p373_p9 }
  0x4c   : > { %381 = shalt.err (!%p378_p11)
}
  0x4d   : > { %s426_s24 = smov 512   ;;  %s427_s26 = smov 32  }
  0x4e   : > { %280 = dma.vmem_to_hbm [thread:$0]  (%p639_p12), %s575_s17, 2048, %s573_s29, %s171_s2, %s426_s24, %s426_s24, %s427_s26  }
  0x4f PF: > { %s200_s30 = sand.u32 1, %s408_s6   ;;  %p640_p13 = scmp.ne.s32.totalorder %s636_s19, 0 }
  0x50   : > { %p641_p4 = scmp.ge.s32.totalorder %s420_s9, 2  ;;  %s201_s25 = scalar_lea.sflag [#allocation4], %s200_s30 }
  0x52   : > { %p287_p5 = pnand %p641_p4, %p640_p13 }
  0x54   : > { %p288_p7 = pneg %p287_p5 }
  0x56   : > { %403 = dma.done.wait (%p288_p7), %s201_s25, 2048  }
  0x57   : > { %405 = vsyncadd (%p288_p7), %s201_s25, 4294965248  ;;  %p14_p8 = scmp.ge.s32.totalorder %s463_s12, 4   ;;  %s642_s6 = smov %s412_s7 }
  0x58   : > { %s643_s7 = smov %s416_s8  ;;  %s644_s8 = smov %s475_s15 }
  0x59   : > { %s645_s9 = smov %s463_s12  ;;  %16 = sbr.rel (!%p14_p8) target bundleno = 5 (0x5), region = 69 }
  0x5e   :  { %206 = vsyncpa [#allocation3], 1 }
  0x5f   :  { %208 = vsyncpa [#allocation3 + $0x1], 1 }
  0x60   :  { %209 = vsyncpa [#allocation4], 1 }
  0x61   :  { %211 = vsyncpa [#allocation4 + $0x1], 1 }

</bundles_post_ra>
